<compile_context>
chip_gen: v7x
topology: tpu7x:2x2x1
jax: 0.10.0
libtpu: 0.0.40
codegen_flags: <defaults>
</compile_context>

<pallas_src>
import functools

import jax
import jax.numpy as jnp
from jax.experimental import pallas as pl
from jax.experimental.pallas import tpu as pltpu

LANES = 128
SUBLANES = 8
NCORES = 2            # leading "parallel" axis; clamped to the tile count below
MAX_TILE_R = 2048     # 2048*128*4B = 1 MiB per input tile
VMEM_LIMIT = 32 * 1024 * 1024   # raise v5e's 16 MiB default; fits all generations


def _contrib(p, t, o1, o2):
    """Per-element (losses - earnings), faithful to the torch forward."""
    rp = jnp.round(p)                       # round half-to-even == torch.round
    msk = rp == t
    return_f1 = (0.5 - p) * o1
    return_f2 = (p - 0.5) * o2
    losses = jnp.where(rp == 0.0, 0.5 - p, p - 0.5)
    earnings = jnp.zeros_like(losses)
    earnings = jnp.where(msk & (t == 0.0), return_f1, earnings)
    earnings = jnp.where(msk & (t == 1.0), return_f2, earnings)
    return losses - earnings


def _betting_loss_kernel(p_ref, t_ref, o1_ref, o2_ref, acc_ref, *,
                         tile_r, steps_per_core, rows_valid):
    i = pl.program_id(1)

    @pl.when(i == 0)
    def _init():
        acc_ref[...] = jnp.zeros_like(acc_ref)

    # Logical (unclamped) row-tile index; only used for range tests.
    blk = pl.program_id(0) * steps_per_core + i

    contrib = _contrib(p_ref[...], t_ref[...], o1_ref[...], o2_ref[...])

    groups = tile_r // SUBLANES
    full = (blk + 1) * tile_r <= rows_valid     # scalar: tile fully in range?

    @pl.when(full)
    def _full_tile():
        acc_ref[...] += contrib.reshape(groups, SUBLANES, LANES).sum(axis=0)

    @pl.when(jnp.logical_not(full))
    def _partial_tile():
        # May be <= 0 for a duplicated tile produced by the clamped index_map.
        rows_rem = rows_valid - blk * tile_r
        row = jax.lax.broadcasted_iota(jnp.int32, (tile_r, LANES), 0)
        masked = jnp.where(row < rows_rem, contrib, 0.0)
        acc_ref[...] += masked.reshape(groups, SUBLANES, LANES).sum(axis=0)


@jax.jit
def betting_loss(predictions, targets, odds_1, odds_2):
    """Pallas equivalent of BettingLoss.forward -> scalar mean."""
    predictions = predictions.astype(jnp.float32)
    targets = targets.astype(jnp.float32)
    odds_1 = odds_1.astype(jnp.float32)
    odds_2 = odds_2.astype(jnp.float32)

    n = predictions.shape[0]
    if n == 0:
        return jnp.float32(jnp.nan)   # torch .mean() of an empty tensor is NaN

    rows = n // LANES                 # 128-aligned prefix rows
    n_main = rows * LANES
    total = jnp.float32(0.0)

    if rows > 0:
        tile_r = min(MAX_TILE_R, ((rows + SUBLANES - 1) // SUBLANES) * SUBLANES)
        num_tiles = (rows + tile_r - 1) // tile_r
        ncores = min(NCORES, num_tiles)            # no duplicated work for small N
        steps_per_core = (num_tiles + ncores - 1) // ncores

        def as2d(x):
            return x[:n_main].reshape(rows, LANES)

        def in_map(c, i):
            # Clamp so the auto-DMA never starts fully out of bounds; the
            # in-kernel row mask zeroes any duplicated tile's contribution.
            return (jnp.minimum(c * steps_per_core + i, num_tiles - 1), 0)

        in_spec = pl.BlockSpec((tile_r, LANES), in_map)
        out_spec = pl.BlockSpec((SUBLANES, LANES), lambda c, i: (c, 0))

        kernel = functools.partial(
            _betting_loss_kernel,
            tile_r=tile_r,
            steps_per_core=steps_per_core,
            rows_valid=rows,
        )

        partials = pl.pallas_call(
            kernel,
            out_shape=jax.ShapeDtypeStruct((ncores * SUBLANES, LANES), jnp.float32),
            grid_spec=pltpu.PrefetchScalarGridSpec(
                num_scalar_prefetch=0,
                grid=(ncores, steps_per_core),
                in_specs=[in_spec, in_spec, in_spec, in_spec],
                out_specs=out_spec,
            ),
            compiler_params=pltpu.CompilerParams(
                dimension_semantics=("parallel", "arbitrary"),
                vmem_limit_bytes=VMEM_LIMIT,
            ),
        )(as2d(predictions), as2d(targets), as2d(odds_1), as2d(odds_2))

        total = total + jnp.sum(partials)

    tail = n - n_main
    if tail:
        # <=127 trailing elements: fold into the scalar sum with plain jnp
        # instead of padding (jnp.pad would copy all four full arrays).
        total = total + jnp.sum(
            _contrib(predictions[n_main:], targets[n_main:],
                     odds_1[n_main:], odds_2[n_main:]))

    return (total / jnp.float32(n)).astype(jnp.float32)


def _reference(predictions, targets, odds_1, odds_2):
    return _contrib(predictions.astype(jnp.float32), targets.astype(jnp.float32),
                    odds_1.astype(jnp.float32), odds_2.astype(jnp.float32)).mean()


def _make_inputs(key, n):
    k1, k2, k3, k4 = jax.random.split(key, 4)
    predictions = jax.random.uniform(k1, (n,), dtype=jnp.float32)          # [0, 1)
    targets = jax.random.bernoulli(k2, 0.5, (n,)).astype(jnp.float32)      # {0., 1.}
    odds_1 = 1.0 + 2.0 * jax.random.uniform(k3, (n,), dtype=jnp.float32)   # [1, 3)
    odds_2 = 1.0 + 2.0 * jax.random.uniform(k4, (n,), dtype=jnp.float32)   # [1, 3)
    return predictions, targets, odds_1, odds_2


if __name__ == "__main__":
    key = jax.random.PRNGKey(0)

    # n=200: single short row tile + 72-element tail handled in the wrapper.
    # n=4097: 32-row aligned prefix + 1-element tail, single full tile.
    # n=1_200_003: multi-tile grid, 2-core split, genuine partial tile and a
    #              clamped/duplicated tile on the second core, 3-element tail.
    for idx, n in enumerate((200, 4097, 1_200_003)):
        sub = jax.random.fold_in(key, idx)
        args = _make_inputs(sub, n)

        out = jax.block_until_ready(betting_loss(*args))
        ref = _reference(*args)
        assert jnp.allclose(out, ref, atol=2e-5, rtol=1e-4), (n, out, ref)

    print("KERNEL_OK")
</pallas_src>

<mosaic_0001>
module attributes {stable_mosaic.version = 11 : i64} {
  func.func @_betting_loss_kernel(%arg0: i32, %arg1: i32, %arg2: memref<8x128xf32, #tpu.memory_space<vmem>>, %arg3: memref<8x128xf32, #tpu.memory_space<vmem>>, %arg4: memref<8x128xf32, #tpu.memory_space<vmem>>, %arg5: memref<8x128xf32, #tpu.memory_space<vmem>>, %arg6: memref<8x128xf32, #tpu.memory_space<vmem>>) attributes {dimension_semantics = [#tpu.dimension_semantics<parallel>, #tpu.dimension_semantics<arbitrary>], iteration_bounds = array<i64: 1, 1>, scalar_prefetch = 0 : i64, scratch_operands = 0 : i64, tpu.core_type = #tpu.core_type<tc>, window_params = [{transform_indices = @transform_0, window_bounds = array<i64: 8, 128>}, {transform_indices = @transform_1, window_bounds = array<i64: 8, 128>}, {transform_indices = @transform_2, window_bounds = array<i64: 8, 128>}, {transform_indices = @transform_3, window_bounds = array<i64: 8, 128>}, {transform_indices = @transform_4, window_bounds = array<i64: 8, 128>}]} {
    %c0_i32 = arith.constant 0 : i32
    %0 = arith.cmpi eq, %arg1, %c0_i32 : i32
    %1 = arith.extui %0 : i1 to i32
    %c0_i32_0 = arith.constant 0 : i32
    %2 = arith.cmpi ne, %1, %c0_i32_0 : i32
    scf.if %2 {
      %cst_19 = arith.constant 0.000000e+00 : f32
      %42 = vector.broadcast %cst_19 : f32 to vector<8x128xf32>
      %c0_20 = arith.constant 0 : index
      %c0_21 = arith.constant 0 : index
      %43 = vector.load %arg6[%c0_20, %c0_21] : memref<8x128xf32, #tpu.memory_space<vmem>>, vector<8x128xf32>
      tpu.vector_store %arg6[%c0_20, %c0_21], %42 {strides = array<i32>} : memref<8x128xf32, #tpu.memory_space<vmem>>, vector<8x128xf32>,
    } else {
    }
    %c1_i32 = arith.constant 1 : i32
    %3 = arith.muli %arg0, %c1_i32 : i32
    %4 = arith.addi %3, %arg1 : i32
    %c0 = arith.constant 0 : index
    %c0_1 = arith.constant 0 : index
    %5 = vector.load %arg2[%c0, %c0_1] : memref<8x128xf32, #tpu.memory_space<vmem>>, vector<8x128xf32>
    %c0_2 = arith.constant 0 : index
    %c0_3 = arith.constant 0 : index
    %6 = vector.load %arg3[%c0_2, %c0_3] : memref<8x128xf32, #tpu.memory_space<vmem>>, vector<8x128xf32>
    %c0_4 = arith.constant 0 : index
    %c0_5 = arith.constant 0 : index
    %7 = vector.load %arg4[%c0_4, %c0_5] : memref<8x128xf32, #tpu.memory_space<vmem>>, vector<8x128xf32>
    %c0_6 = arith.constant 0 : index
    %c0_7 = arith.constant 0 : index
    %8 = vector.load %arg5[%c0_6, %c0_7] : memref<8x128xf32, #tpu.memory_space<vmem>>, vector<8x128xf32>
    %9 = math.roundeven %5 : vector<8x128xf32>
    %10 = arith.cmpf oeq, %9, %6 : vector<8x128xf32>
    %cst = arith.constant 5.000000e-01 : f32
    %11 = vector.broadcast %cst : f32 to vector<8x128xf32>
    %12 = arith.subf %11, %5 : vector<8x128xf32>
    %13 = arith.mulf %12, %7 : vector<8x128xf32>
    %cst_8 = arith.constant 5.000000e-01 : f32
    %14 = vector.broadcast %cst_8 : f32 to vector<8x128xf32>
    %15 = arith.subf %5, %14 : vector<8x128xf32>
    %16 = arith.mulf %15, %8 : vector<8x128xf32>
    %cst_9 = arith.constant 0.000000e+00 : f32
    %17 = vector.broadcast %cst_9 : f32 to vector<8x128xf32>
    %18 = arith.cmpf oeq, %9, %17 : vector<8x128xf32>
    %cst_10 = arith.constant 5.000000e-01 : f32
    %19 = vector.broadcast %cst_10 : f32 to vector<8x128xf32>
    %20 = arith.subf %19, %5 : vector<8x128xf32>
    %cst_11 = arith.constant 5.000000e-01 : f32
    %21 = vector.broadcast %cst_11 : f32 to vector<8x128xf32>
    %22 = arith.subf %5, %21 : vector<8x128xf32>
    %23 = arith.select %18, %20, %22 : vector<8x128xi1>, vector<8x128xf32>
    %cst_12 = arith.constant 0.000000e+00 : f32
    %24 = vector.broadcast %cst_12 : f32 to vector<8x128xf32>
    %cst_13 = arith.constant 0.000000e+00 : f32
    %25 = vector.broadcast %cst_13 : f32 to vector<8x128xf32>
    %26 = arith.cmpf oeq, %6, %25 : vector<8x128xf32>
    %27 = arith.andi %10, %26 : vector<8x128xi1>
    %28 = arith.select %27, %13, %24 : vector<8x128xi1>, vector<8x128xf32>
    %cst_14 = arith.constant 1.000000e+00 : f32
    %29 = vector.broadcast %cst_14 : f32 to vector<8x128xf32>
    %30 = arith.cmpf oeq, %6, %29 : vector<8x128xf32>
    %31 = arith.andi %10, %30 : vector<8x128xi1>
    %32 = arith.select %31, %16, %28 : vector<8x128xi1>, vector<8x128xf32>
    %33 = arith.subf %23, %32 : vector<8x128xf32>
    %c1_i32_15 = arith.constant 1 : i32
    %34 = arith.addi %4, %c1_i32_15 : i32
    %c8_i32 = arith.constant 8 : i32
    %35 = arith.muli %34, %c8_i32 : i32
    %c1_i32_16 = arith.constant 1 : i32
    %36 = arith.cmpi sle, %35, %c1_i32_16 : i32
    %37 = arith.extui %36 : i1 to i32
    %c0_i32_17 = arith.constant 0 : i32
    %38 = arith.cmpi ne, %37, %c0_i32_17 : i32
    scf.if %38 {
      %c0_19 = arith.constant 0 : index
      %c0_20 = arith.constant 0 : index
      %42 = vector.load %arg6[%c0_19, %c0_20] : memref<8x128xf32, #tpu.memory_space<vmem>>, vector<8x128xf32>
      %43 = vector.shape_cast %33 : vector<8x128xf32> to vector<1x8x128xf32>
      %cst_21 = arith.constant dense<0.000000e+00> : vector<8x128xf32>
      %44 = vector.multi_reduction <add>, %43, %cst_21 [0] : vector<1x8x128xf32> to vector<8x128xf32>
      %45 = arith.addf %42, %44 : vector<8x128xf32>
      %c0_22 = arith.constant 0 : index
      %c0_23 = arith.constant 0 : index
      %46 = vector.load %arg6[%c0_22, %c0_23] : memref<8x128xf32, #tpu.memory_space<vmem>>, vector<8x128xf32>
      tpu.vector_store %arg6[%c0_22, %c0_23], %45 {strides = array<i32>} : memref<8x128xf32, #tpu.memory_space<vmem>>, vector<8x128xf32>,
    } else {
    }
    %true = arith.constant true
    %39 = arith.xori %36, %true : i1
    %40 = arith.extui %39 : i1 to i32
    %c0_i32_18 = arith.constant 0 : i32
    %41 = arith.cmpi ne, %40, %c0_i32_18 : i32
    scf.if %41 {
      %c8_i32_19 = arith.constant 8 : i32
      %42 = arith.muli %4, %c8_i32_19 : i32
      %c1_i32_20 = arith.constant 1 : i32
      %43 = arith.subi %c1_i32_20, %42 : i32
      %44 = tpu.iota {dimensions = array<i32: 0>} : vector<8x128xi32>
      %45 = vector.broadcast %43 : i32 to vector<8x128xi32>
      %46 = arith.cmpi slt, %44, %45 : vector<8x128xi32>
      %cst_21 = arith.constant 0.000000e+00 : f32
      %47 = vector.broadcast %cst_21 : f32 to vector<8x128xf32>
      %48 = arith.select %46, %33, %47 : vector<8x128xi1>, vector<8x128xf32>
      %c0_22 = arith.constant 0 : index
      %c0_23 = arith.constant 0 : index
      %49 = vector.load %arg6[%c0_22, %c0_23] : memref<8x128xf32, #tpu.memory_space<vmem>>, vector<8x128xf32>
      %50 = vector.shape_cast %48 : vector<8x128xf32> to vector<1x8x128xf32>
      %cst_24 = arith.constant dense<0.000000e+00> : vector<8x128xf32>
      %51 = vector.multi_reduction <add>, %50, %cst_24 [0] : vector<1x8x128xf32> to vector<8x128xf32>
      %52 = arith.addf %49, %51 : vector<8x128xf32>
      %c0_25 = arith.constant 0 : index
      %c0_26 = arith.constant 0 : index
      %53 = vector.load %arg6[%c0_25, %c0_26] : memref<8x128xf32, #tpu.memory_space<vmem>>, vector<8x128xf32>
      tpu.vector_store %arg6[%c0_25, %c0_26], %52 {strides = array<i32>} : memref<8x128xf32, #tpu.memory_space<vmem>>, vector<8x128xf32>,
    } else {
    }
    return
  }
  func.func @transform_0(%arg0: i32, %arg1: i32) -> (i32, i32) {
    %c1_i32 = arith.constant 1 : i32
    %0 = arith.muli %arg0, %c1_i32 : i32
    %1 = arith.addi %0, %arg1 : i32
    %c0_i32 = arith.constant 0 : i32
    %2 = arith.minsi %1, %c0_i32 : i32
    %c0_i32_0 = arith.constant 0 : i32
    %c0_i32_1 = arith.constant 0 : i32
    return %2, %c0_i32_0 : i32, i32
  }
  func.func @transform_1(%arg0: i32, %arg1: i32) -> (i32, i32) {
    %c1_i32 = arith.constant 1 : i32
    %0 = arith.muli %arg0, %c1_i32 : i32
    %1 = arith.addi %0, %arg1 : i32
    %c0_i32 = arith.constant 0 : i32
    %2 = arith.minsi %1, %c0_i32 : i32
    %c0_i32_0 = arith.constant 0 : i32
    %c0_i32_1 = arith.constant 0 : i32
    return %2, %c0_i32_0 : i32, i32
  }
  func.func @transform_2(%arg0: i32, %arg1: i32) -> (i32, i32) {
    %c1_i32 = arith.constant 1 : i32
    %0 = arith.muli %arg0, %c1_i32 : i32
    %1 = arith.addi %0, %arg1 : i32
    %c0_i32 = arith.constant 0 : i32
    %2 = arith.minsi %1, %c0_i32 : i32
    %c0_i32_0 = arith.constant 0 : i32
    %c0_i32_1 = arith.constant 0 : i32
    return %2, %c0_i32_0 : i32, i32
  }
  func.func @transform_3(%arg0: i32, %arg1: i32) -> (i32, i32) {
    %c1_i32 = arith.constant 1 : i32
    %0 = arith.muli %arg0, %c1_i32 : i32
    %1 = arith.addi %0, %arg1 : i32
    %c0_i32 = arith.constant 0 : i32
    %2 = arith.minsi %1, %c0_i32 : i32
    %c0_i32_0 = arith.constant 0 : i32
    %c0_i32_1 = arith.constant 0 : i32
    return %2, %c0_i32_0 : i32, i32
  }
  func.func @transform_4(%arg0: i32, %arg1: i32) -> (i32, i32) {
    %c0_i32 = arith.constant 0 : i32
    %c0_i32_0 = arith.constant 0 : i32
    return %arg0, %c0_i32 : i32, i32
  }
}

</mosaic_0001>

<bundles_post_ra>
// kernel: betting_loss.1
= control target key start
LH: loop header
LB: loop body
LE: loop exit
PB: predicated region body
PF: predicated region fallthrough
CT: control target
= control target key end

     0   :  { %v214_v0 = vlaneseq  ;;  %s282_s0 = inlined_call_operand.vmem [shape: f32[1,128], index: 0, kind: input, shape index: {}]   ;;  %s283_s1 = inlined_call_operand.vmem [shape: f32[1,128], index: 1, kind: input, shape index: {}]   ;;  %s284_s2 = inlined_call_operand.vmem [shape: f32[1,128], index: 2, kind: input, shape index: {}]   ;;  %s285_s3 = inlined_call_operand.vmem [shape: f32[1,128], index: 3, kind: input, shape index: {}]   ;;  %s286_s4 = inlined_call_operand.vmem [shape: f32[8,128], index: 4, kind: output, shape index: {}]  }
   0x1   :  { %v179_v1 = vld [vmem:[%s282_s0] sm:$0xff] }
   0x2   :  { %v180_v2 = vld [vmem:[%s283_s1] sm:$0xff]  ;;  %v240_v5 = vround.rtne.f32 %v179_v1  ;;  %v185_v6 = vsub.f32 0.5, %v179_v1  ;;  %v239_v7 = vadd.f32 -0.5, %v179_v1  ;;  %v215_v8 = vshrl.u32 %v214_v0, 7 }
   0x3   :  { %v181_v3 = vld [vmem:[%s284_s2] sm:$0xff]  ;;  %vm191_vm0 = vcmp.eq.f32.partialorder %v180_v2, 0.0  ;;  %vm194_vm1 = vcmp.eq.f32.partialorder %v180_v2, 1.0 }
   0x4   :  { %v182_v4 = vld [vmem:[%s285_s3] sm:$0xff]  ;;  %vm184_vm2 = vcmp.eq.f32.partialorder %v240_v5, %v180_v2  ;;  %v186_v9 = vmul.f32 %v185_v6, %v181_v3  ;;  %vm189_vm3 = vcmp.eq.f32.partialorder %v240_v5, 0.0  ;;  %vm217_vm6 = vcmp.lt.s32.totalorder %v215_v8, 1 }
   0x5   :  { %v188_v10 = vmul.f32 %v239_v7, %v182_v4  ;;  %v190_v11 = vsel %vm189_vm3, %v185_v6, %v239_v7  ;;  %vm192_vm4 = vmand %vm184_vm2, %vm191_vm0 }
   0x6   :  { %v193_v12 = vsel %vm192_vm4, %v186_v9, 0.0  ;;  %vm195_vm5 = vmand %vm184_vm2, %vm194_vm1 }
   0x7   :  { %v196_v13 = vsel %vm195_vm5, %v188_v10, %v193_v12 }
   0x8   :  { %v197_v14 = vsub.f32 %v190_v11, %v196_v13 }
   0xa   :  { %v218_v15 = vsel %vm217_vm6, %v197_v14, 0.0 }
   0xb   :  { %222 = vst [vmem:[%s286_s4] sm:$0xff] %v218_v15 }

</bundles_post_ra>
